<compile_context>
chip_gen: v7x
topology: tpu7x:2x2x1
jax: 0.10.0
libtpu: 0.0.40
codegen_flags: <defaults>
</compile_context>

<pallas_src>
import functools

import numpy as np
import jax
import jax.numpy as jnp
from jax import lax
from jax.experimental import pallas as pl
from jax.experimental.pallas import tpu as pltpu


def _round_up(x, m):
    return (x + m - 1) // m * m


def _conv_pool_kernel(w_ref, p_ref, o_ref, *, T, Gpad):
    """Fused conv (one MXU matmul, bias folded in) + MaxPool (T-way lane-slab max).

    w_ref: (Cout, Kpad)      bf16  im2col weights, bias in column K0
    p_ref: (Kpad, T * Gpad)  bf16  im2col patches, lane = offset * Gpad + pool cell
    o_ref: (Cout, Gpad)      f32   pooled output, lane = pool cell
    """
    conv = jnp.dot(w_ref[...], p_ref[...],
                   preferred_element_type=jnp.float32)      # (Cout, T*Gpad)
    r = conv[:, 0:Gpad]
    for t in range(1, T):                                    # MaxPool: 8 wide max ops,
        r = jnp.maximum(r, conv[:, t * Gpad:(t + 1) * Gpad])  # lane-tile aligned slices
    o_ref[...] = r                                           # single lane-dense store


def conv_maxpool(x_nchw, w_oihw, b, *, pool_k=3, pool_s=3, pool_pad=1):
    N, Cin, Hin, Win = x_nchw.shape
    Cout, Cin_w, KH, KW = w_oihw.shape
    assert Cin_w == Cin
    Hout, Wout = Hin - KH + 1, Win - KW + 1
    Hpool = (Hout + 2 * pool_pad - pool_k) // pool_s + 1
    Wpool = (Wout + 2 * pool_pad - pool_k) // pool_s + 1

    K0 = Cin * KH * KW                       # real im2col depth (90)
    Kpad = _round_up(K0 + 1, 128)            # +1 bias ones-row, pad to lane width
    G = N * Hpool * Wpool                    # one lane per (n, i, j) pool cell
    Gpad = _round_up(max(G, 1), 128)
    T = pool_k * pool_k                      # pool-window taps per cell

    # -------- wrapper glue: pure layout (gather / reshape / pad), no compute --------
    # Conv taps for every output pixel; k = c*KH*KW + kh*KW + kw (matches OIHW reshape).
    x_nhwc = jnp.transpose(x_nchw, (0, 2, 3, 1)).astype(jnp.float32)     # (N,Hin,Win,Cin)
    taps = [x_nhwc[:, kh:kh + Hout, kw:kw + Wout, :]
            for kh in range(KH) for kw in range(KW)]
    P = jnp.stack(taps, axis=-1).reshape(N, Hout, Wout, K0)              # (N,Hout,Wout,K0)

    # Pool-window tap coordinates, clamped into range (duplicates are no-ops under max;
    # clamping also keeps this correct for other pool_k / pool_pad / input sizes).
    hh = np.clip(pool_s * np.arange(Hpool)[:, None]
                 + np.arange(pool_k)[None, :] - pool_pad, 0, Hout - 1)   # (Hpool, pool_k)
    ww = np.clip(pool_s * np.arange(Wpool)[:, None]
                 + np.arange(pool_k)[None, :] - pool_pad, 0, Wout - 1)   # (Wpool, pool_k)

    Q = jnp.take(P, jnp.asarray(hh.reshape(-1)), axis=1)
    Q = Q.reshape(N, Hpool, pool_k, Wout, K0)
    Q = jnp.take(Q, jnp.asarray(ww.reshape(-1)), axis=3)
    Q = Q.reshape(N, Hpool, pool_k, Wpool, pool_k, K0)
    # -> (dh, dw, n, i, j, k): offset-major so each offset is one aligned lane slab.
    Q = jnp.transpose(Q, (2, 4, 0, 1, 3, 5)).reshape(T, G, K0)
    Q = jnp.transpose(Q, (0, 2, 1))                                      # (T, K0, G)
    Q = jnp.pad(Q, ((0, 0), (0, Kpad - K0), (0, Gpad - G)))
    Q = Q.at[:, K0, :].set(1.0)                                          # bias ones-row
    patch = jnp.transpose(Q, (1, 0, 2)).reshape(Kpad, T * Gpad)
    patch = patch.astype(jnp.bfloat16)                                   # halve input DMA

    w2 = w_oihw.reshape(Cout, K0).astype(jnp.float32)
    w2 = jnp.pad(w2, ((0, 0), (0, Kpad - K0)))
    w2 = w2.at[:, K0].set(b.astype(jnp.float32))                         # fold bias in
    w2 = w2.astype(jnp.bfloat16)

    kernel = functools.partial(_conv_pool_kernel, T=T, Gpad=Gpad)
    pooled = pl.pallas_call(
        kernel,
        out_shape=jax.ShapeDtypeStruct((Cout, Gpad), jnp.float32),
        grid_spec=pltpu.PrefetchScalarGridSpec(
            num_scalar_prefetch=0,
            grid=(1,),                        # batch folded into lanes: one fused step
            in_specs=[
                pl.BlockSpec((Cout, Kpad), lambda i: (0, 0)),
                pl.BlockSpec((Kpad, T * Gpad), lambda i: (0, 0)),
            ],
            out_specs=pl.BlockSpec((Cout, Gpad), lambda i: (0, 0)),
        ),
        compiler_params=pltpu.CompilerParams(
            dimension_semantics=("arbitrary",)),
    )(w2, patch)

    # Lane -> (n, i, j); back to PyTorch NCHW.
    out = pooled[:, :G].reshape(Cout, N, Hpool, Wpool)
    return jnp.transpose(out, (1, 0, 2, 3))


def _reference(x_nchw, w_oihw, b):
    conv = lax.conv_general_dilated(
        x_nchw, w_oihw, window_strides=(1, 1), padding="VALID",
        dimension_numbers=("NCHW", "OIHW", "NCHW"))
    conv = conv + b[None, :, None, None]
    return lax.reduce_window(
        conv, -jnp.inf, lax.max,
        window_dimensions=(1, 1, 3, 3),
        window_strides=(1, 1, 3, 3),
        padding=((0, 0), (0, 0), (1, 1), (1, 1)))


if __name__ == "__main__":
    key = jax.random.PRNGKey(0)
    kx, kw, kb = jax.random.split(key, 3)

    N, Cin, Cout, K, H, W = 2, 10, 16, 3, 16, 16

    # Deterministic parameter init (Conv2d-style uniform bounds).
    fan_in = Cin * K * K
    bound = 1.0 / float(np.sqrt(fan_in))
    x = jax.random.normal(kx, (N, Cin, H, W), dtype=jnp.float32)
    w = jax.random.uniform(kw, (Cout, Cin, K, K), dtype=jnp.float32,
                           minval=-bound, maxval=bound)
    b = jax.random.uniform(kb, (Cout,), dtype=jnp.float32,
                           minval=-bound, maxval=bound)

    out = jax.block_until_ready(conv_maxpool(x, w, b))

    # Reference from the same bf16-rounded inputs the kernel consumes, so only
    # accumulation-order noise remains (kernel accumulates in f32 on the MXU).
    xb = x.astype(jnp.bfloat16).astype(jnp.float32)
    wb = w.astype(jnp.bfloat16).astype(jnp.float32)
    bb = b.astype(jnp.bfloat16).astype(jnp.float32)
    ref = jax.block_until_ready(_reference(xb, wb, bb))

    assert out.shape == ref.shape == (N, Cout, 5, 5), (out.shape, ref.shape)
    max_err = float(jnp.max(jnp.abs(out - ref)))
    assert jnp.allclose(out, ref, atol=1e-3, rtol=1e-3), max_err

    print("KERNEL_OK")
</pallas_src>

<mosaic_0001>
module attributes {stable_mosaic.version = 11 : i64} {
  func.func @_conv_pool_kernel(%arg0: i32, %arg1: memref<16x128xbf16, #tpu.memory_space<vmem>>, %arg2: memref<128x1152xbf16, #tpu.memory_space<vmem>>, %arg3: memref<16x128xf32, #tpu.memory_space<vmem>>) attributes {dimension_semantics = [#tpu.dimension_semantics<arbitrary>], iteration_bounds = array<i64: 1>, scalar_prefetch = 0 : i64, scratch_operands = 0 : i64, tpu.core_type = #tpu.core_type<tc>, window_params = [{pipeline_mode = #tpu.pipeline_mode<synchronous>, transform_indices = @transform_0, window_bounds = array<i64: 16, 128>}, {pipeline_mode = #tpu.pipeline_mode<synchronous>, transform_indices = @transform_1, window_bounds = array<i64: 128, 1152>}, {pipeline_mode = #tpu.pipeline_mode<synchronous>, transform_indices = @transform_2, window_bounds = array<i64: 16, 128>}]} {
    %c0 = arith.constant 0 : index
    %c0_0 = arith.constant 0 : index
    %0 = vector.load %arg1[%c0, %c0_0] : memref<16x128xbf16, #tpu.memory_space<vmem>>, vector<16x128xbf16>
    %c0_1 = arith.constant 0 : index
    %c0_2 = arith.constant 0 : index
    %1 = vector.load %arg2[%c0_1, %c0_2] : memref<128x1152xbf16, #tpu.memory_space<vmem>>, vector<128x1152xbf16>
    %cst = arith.constant dense<0.000000e+00> : vector<16x1152xf32>
    %2 = tpu.matmul %0, %1, %cst {dimension_numbers = #tpu.dot_dimension_numbers<[1], [0], [0], [1], [0, 0, 1, 1], [], []>} : vector<16x128xbf16>, vector<128x1152xbf16>, vector<16x1152xf32> -> vector<16x1152xf32>
    %3 = vector.extract_strided_slice %2 {offsets = [0, 0], sizes = [16, 128], strides = [1, 1]} : vector<16x1152xf32> to vector<16x128xf32>
    %4 = vector.extract_strided_slice %2 {offsets = [0, 128], sizes = [16, 128], strides = [1, 1]} : vector<16x1152xf32> to vector<16x128xf32>
    %5 = arith.maximumf %3, %4 : vector<16x128xf32>
    %6 = vector.extract_strided_slice %2 {offsets = [0, 256], sizes = [16, 128], strides = [1, 1]} : vector<16x1152xf32> to vector<16x128xf32>
    %7 = arith.maximumf %5, %6 : vector<16x128xf32>
    %8 = vector.extract_strided_slice %2 {offsets = [0, 384], sizes = [16, 128], strides = [1, 1]} : vector<16x1152xf32> to vector<16x128xf32>
    %9 = arith.maximumf %7, %8 : vector<16x128xf32>
    %10 = vector.extract_strided_slice %2 {offsets = [0, 512], sizes = [16, 128], strides = [1, 1]} : vector<16x1152xf32> to vector<16x128xf32>
    %11 = arith.maximumf %9, %10 : vector<16x128xf32>
    %12 = vector.extract_strided_slice %2 {offsets = [0, 640], sizes = [16, 128], strides = [1, 1]} : vector<16x1152xf32> to vector<16x128xf32>
    %13 = arith.maximumf %11, %12 : vector<16x128xf32>
    %14 = vector.extract_strided_slice %2 {offsets = [0, 768], sizes = [16, 128], strides = [1, 1]} : vector<16x1152xf32> to vector<16x128xf32>
    %15 = arith.maximumf %13, %14 : vector<16x128xf32>
    %16 = vector.extract_strided_slice %2 {offsets = [0, 896], sizes = [16, 128], strides = [1, 1]} : vector<16x1152xf32> to vector<16x128xf32>
    %17 = arith.maximumf %15, %16 : vector<16x128xf32>
    %18 = vector.extract_strided_slice %2 {offsets = [0, 1024], sizes = [16, 128], strides = [1, 1]} : vector<16x1152xf32> to vector<16x128xf32>
    %19 = arith.maximumf %17, %18 : vector<16x128xf32>
    %c0_3 = arith.constant 0 : index
    %c0_4 = arith.constant 0 : index
    %20 = vector.load %arg3[%c0_3, %c0_4] : memref<16x128xf32, #tpu.memory_space<vmem>>, vector<16x128xf32>
    tpu.vector_store %arg3[%c0_3, %c0_4], %19 {strides = array<i32>} : memref<16x128xf32, #tpu.memory_space<vmem>>, vector<16x128xf32>,
    return
  }
  func.func @transform_0(%arg0: i32) -> (i32, i32) {
    %c0_i32 = arith.constant 0 : i32
    %c0_i32_0 = arith.constant 0 : i32
    %c0_i32_1 = arith.constant 0 : i32
    return %c0_i32, %c0_i32_0 : i32, i32
  }
  func.func @transform_1(%arg0: i32) -> (i32, i32) {
    %c0_i32 = arith.constant 0 : i32
    %c0_i32_0 = arith.constant 0 : i32
    %c0_i32_1 = arith.constant 0 : i32
    return %c0_i32, %c0_i32_0 : i32, i32
  }
  func.func @transform_2(%arg0: i32) -> (i32, i32) {
    %c0_i32 = arith.constant 0 : i32
    %c0_i32_0 = arith.constant 0 : i32
    %c0_i32_1 = arith.constant 0 : i32
    return %c0_i32, %c0_i32_0 : i32, i32
  }
}

</mosaic_0001>

<bundles_post_ra>
// kernel: tpu_custom_call.1
= control target key start
LH: loop header
LB: loop body
LE: loop exit
PB: predicated region body
PF: predicated region fallthrough
CT: control target
= control target key end

     0   :  { %7 = vsyncpa [#allocation3], 0  ;;  %s1111_s0 = inlined_call_operand.hbm [shape: bf16[16,128], index: 0, kind: input, shape index: {}]   ;;  %s1112_s1 = inlined_call_operand.hbm [shape: bf16[128,1152], index: 1, kind: input, shape index: {}]   ;;  %s1113_s2 = inlined_call_operand.hbm [shape: f32[16,128], index: 2, kind: output, shape index: {}]  }
   0x1   :  { %8 = vsyncpa [#allocation6], 0 }
   0x2   :  { %9 = vsyncpa [#allocation4], 0  ;;  %s1037_s9 = smov [#allocation2]   ;;  %s965_s13 = scalar_lea.hbm %s1111_s0, 128 }
   0x3   :  { %s15_s10 = sshll.u32 %s1037_s9, 4  ;;  %p966_p0 = scmp.ne.s32.totalorder %s1111_s0, %s965_s13  ;;  %s16_s10 = int_to_ptr.vmem [resolvable:$true] %s15_s10 }
   0x4   :  { %p969_p1 = scmp.lt.u32.totalorder %s965_s13, %s1111_s0 }
   0x6   :  { %p971_p2 = pnand %p969_p1, %p966_p0 }
   0x8   :  { %974 = shalt.err (!%p971_p2)
}
   0x9   :  { %s975_s18 = scalar_lea.vmem %s16_s10, 128  ;;  %p980_p4 = scmp.lt.s32.totalorder %s16_s10, %s16_s10 }
   0xa   :  { %p976_p3 = scmp.ne.s32.totalorder %s16_s10, %s975_s18  ;;  %p981_p5 = scmp.lt.s32.totalorder %s975_s18, %s975_s18 }
   0xc   :  { %p982_p6 = por %p981_p5, %p980_p4 }
   0xe   :  { %p983_p7 = pnand %p982_p6, %p976_p3 }
  0x10   :  { %986 = shalt.err (!%p983_p7)
}
  0x11   :  { %s1038_s19 = smov 64   ;;  %s1039_s20 = smov 4  }
  0x12   :  { %21 = dma.hbm_to_vmem [thread:$0]  %s1111_s0, 128, %s16_s10, [#allocation3], %s1038_s19, %s1038_s19, %s1039_s20  }
  0x13   :  { %s1040_s23 = smov [#allocation5]   ;;  %s987_s27 = scalar_lea.hbm %s1112_s1, 9216 }
  0x14   :  { %s27_s24 = sshll.u32 %s1040_s23, 4  ;;  %p988_p8 = scmp.ne.s32.totalorder %s1112_s1, %s987_s27  ;;  %s28_s24 = int_to_ptr.vmem [resolvable:$true] %s27_s24 }
  0x15   :  { %p991_p9 = scmp.lt.u32.totalorder %s987_s27, %s1112_s1 }
  0x17   :  { %p993_p10 = pnand %p991_p9, %p988_p8 }
  0x19   :  { %996 = shalt.err (!%p993_p10)
}
  0x1a   :  { %s997_s4 = scalar_lea.vmem %s28_s24, 9216  ;;  %p1002_p12 = scmp.lt.s32.totalorder %s28_s24, %s28_s24 }
  0x1b   :  { %p998_p11 = scmp.ne.s32.totalorder %s28_s24, %s997_s4  ;;  %p1003_p13 = scmp.lt.s32.totalorder %s997_s4, %s997_s4 }
  0x1d   :  { %p1004_p0 = por %p1003_p13, %p1002_p12 }
  0x1f   :  { %p1005_p1 = pnand %p1004_p0, %p998_p11 }
  0x21   :  { %1008 = shalt.err (!%p1005_p1)
}
  0x22   :  { %s1041_s0 = smov 576   ;;  %s1042_s5 = smov 36  }
  0x23   :  { %33 = dma.hbm_to_vmem [thread:$0]  %s1112_s1, 9216, %s28_s24, [#allocation6], %s1041_s0, %s1041_s0, %s1042_s5  }
  0x24   :  { %1031 = dma.done.wait [#allocation3], 128  }
  0x25   :  { %1032 = vsyncadd [#allocation3], 4294967168 }
  0x26   :  { %1033 = dma.done.wait [#allocation6], 9216  }
  0x27   :  { %1034 = vsyncadd [#allocation6], 4294958080  ;;  %v1043_v0 = vmov 0   ;;  %v860_v1 = vld [vmem:[#allocation5 + $0x4] ss:$36 sps:$4 sm:$0xff]   ;;  %v1090_v32 = vld [vmem:[#allocation2] sm:$0xff]  }
  0x28   :  { %529 = vmatprep.mubr.bf16.mxu0 %v1043_v0  ;;  %572 = vmatprep.mubr.bf16.mxu1 %v1043_v0  ;;  %v862_v2 = vld [vmem:[#allocation5] ss:$36 sps:$4 sm:$0xff]   ;;  %v863_v3 = vld [vmem:[#allocation5 + $0xc] ss:$36 sps:$4 sm:$0xff]   ;;  %v869_v7 = vld [vmem:[#allocation5 + $0x54] ss:$36 sps:$4 sm:$0xff]  }
  0x29   :  { %497 = vmatprep.subr.bf16.mxu0 %v860_v1  ;;  %v865_v4 = vld [vmem:[#allocation5 + $0x4c] ss:$36 sps:$4 sm:$0xff]   ;;  %540 = vmatprep.subr.bf16.mxu1 %v863_v3  ;;  %v871_v8 = vld [vmem:[#allocation5 + $0x94] ss:$36 sps:$4 sm:$0xff]   ;;  %v875_v11 = vld [vmem:[#allocation5 + $0x9c] ss:$36 sps:$4 sm:$0xff]  }
  0x2a   :  { %498 = vmatpush1.bf16.msra.mxu0 %v862_v2  ;;  %v867_v5 = vld [vmem:[#allocation5 + $0x8] ss:$36 sps:$4 sm:$0xff]   ;;  %v873_v9 = vld [vmem:[#allocation5 + $0x50] ss:$36 sps:$4 sm:$0xff]   ;;  %v877_v12 = vld [vmem:[#allocation5 + $0xdc] ss:$36 sps:$4 sm:$0xff]  }
  0x2b   :  { %v868_v6 = vld [vmem:[#allocation5 + $0x48] ss:$36 sps:$4 sm:$0xff]   ;;  %499 = vmatprep.subr.bf16.mxu0 %v865_v4  ;;  %541 = vmatpush1.bf16.msra.mxu1 %v867_v5  ;;  %v874_v10 = vld [vmem:[#allocation5 + $0x90] ss:$36 sps:$4 sm:$0xff]   ;;  %v879_v13 = vld [vmem:[#allocation5 + $0x98] ss:$36 sps:$4 sm:$0xff]  }
  0x2c   :  { %542 = vmatprep.subr.bf16.mxu1 %v869_v7  ;;  %v881_v14 = vld [vmem:[#allocation5 + $0xe4] ss:$36 sps:$4 sm:$0xff]   ;;  %v880_v15 = vld [vmem:[#allocation5 + $0xd8] ss:$36 sps:$4 sm:$0xff]   ;;  %v887_v18 = vld [vmem:[#allocation5 + $0x12c] ss:$36 sps:$4 sm:$0xff]  }
  0x2d   :  { %v883_v16 = vld [vmem:[#allocation5 + $0x124] ss:$36 sps:$4 sm:$0xff]   ;;  %v889_v20 = vld [vmem:[#allocation5 + $0x16c] ss:$36 sps:$4 sm:$0xff]   ;;  %v893_v22 = vld [vmem:[#allocation5 + $0x174] ss:$36 sps:$4 sm:$0xff]  }
  0x2e   :  { %500 = vmatpush1.bf16.msra.mxu0 %v868_v6  ;;  %v885_v17 = vld [vmem:[#allocation5 + $0xe0] ss:$36 sps:$4 sm:$0xff]   ;;  %v891_v21 = vld [vmem:[#allocation5 + $0x128] ss:$36 sps:$4 sm:$0xff]   ;;  %v895_v24 = vld [vmem:[#allocation5 + $0x1b4] ss:$36 sps:$4 sm:$0xff]  }
  0x2f   :  { %501 = vmatprep.subr.bf16.mxu0 %v871_v8  ;;  %543 = vmatpush1.bf16.msra.mxu1 %v873_v9  ;;  %v886_v19 = vld [vmem:[#allocation5 + $0x120] ss:$36 sps:$4 sm:$0xff]   ;;  %v892_v23 = vld [vmem:[#allocation5 + $0x168] ss:$36 sps:$4 sm:$0xff]   ;;  %v897_v25 = vld [vmem:[#allocation5 + $0x170] ss:$36 sps:$4 sm:$0xff]  }
  0x30   :  { %544 = vmatprep.subr.bf16.mxu1 %v875_v11  ;;  %v899_v26 = vld [vmem:[#allocation5 + $0x1bc] ss:$36 sps:$4 sm:$0xff]   ;;  %v898_v27 = vld [vmem:[#allocation5 + $0x1b0] ss:$36 sps:$4 sm:$0xff]   ;;  %v905_v30 = vld [vmem:[#allocation5 + $0x204] ss:$36 sps:$4 sm:$0xff]  }
  0x31   :  { %v901_v28 = vld [vmem:[#allocation5 + $0x1fc] ss:$36 sps:$4 sm:$0xff]   ;;  %v911_v33 = vld [vmem:[#allocation5 + $0x14] ss:$36 sps:$4 sm:$0xff]   ;;  %v923_v39 = vld [vmem:[#allocation5 + $0x64] ss:$36 sps:$4 sm:$0xff]  }
  0x32   :  { %502 = vmatpush1.bf16.msra.mxu0 %v874_v10  ;;  %v903_v29 = vld [vmem:[#allocation5 + $0x1b8] ss:$36 sps:$4 sm:$0xff]   ;;  %v908_v34 = vld [vmem:[#allocation5 + $0x200] ss:$36 sps:$4 sm:$0xff]   ;;  %v909_v36 = vld [vmem:[#allocation5 + $0x10] ss:$36 sps:$4 sm:$0xff]  }
  0x33   :  { %503 = vmatprep.subr.bf16.mxu0 %v877_v12  ;;  %545 = vmatpush1.bf16.msra.mxu1 %v879_v13  ;;  %v904_v31 = vld [vmem:[#allocation5 + $0x1f8] ss:$36 sps:$4 sm:$0xff]   ;;  %v920_v41 = vld [vmem:[#allocation5 + $0xa4] ss:$36 sps:$4 sm:$0xff]   ;;  %v929_v43 = vld [vmem:[#allocation5 + $0xac] ss:$36 sps:$4 sm:$0xff]  }
  0x34   :  { %546 = vmatprep.subr.bf16.mxu1 %v881_v14  ;;  %v917_v35 = vld [vmem:[#allocation5 + $0x1c] ss:$36 sps:$4 sm:$0xff]   ;;  %v926_v45 = vld [vmem:[#allocation5 + $0xec] ss:$36 sps:$4 sm:$0xff]   ;;  %v935_v47 = vld [vmem:[#allocation5 + $0xf4] ss:$36 sps:$4 sm:$0xff]  }
  0x35   :  { %v914_v37 = vld [vmem:[#allocation5 + $0x5c] ss:$36 sps:$4 sm:$0xff]   ;;  %v927_v46 = vld [vmem:[#allocation5 + $0xa8] ss:$36 sps:$4 sm:$0xff]   ;;  %v932_v49 = vld [vmem:[#allocation5 + $0x134] ss:$36 sps:$4 sm:$0xff]  }
  0x36   :  { %504 = vmatpush1.bf16.msra.mxu0 %v880_v15  ;;  %v915_v38 = vld [vmem:[#allocation5 + $0x18] ss:$36 sps:$4 sm:$0xff]   ;;  %v921_v42 = vld [vmem:[#allocation5 + $0x60] ss:$36 sps:$4 sm:$0xff]   ;;  %v924_v48 = vld [vmem:[#allocation5 + $0xe8] ss:$36 sps:$4 sm:$0xff]  }
  0x37   :  { %505 = vmatprep.subr.bf16.mxu0 %v883_v16  ;;  %547 = vmatpush1.bf16.msra.mxu1 %v885_v17  ;;  %v912_v40 = vld [vmem:[#allocation5 + $0x58] ss:$36 sps:$4 sm:$0xff]   ;;  %v918_v44 = vld [vmem:[#allocation5 + $0xa0] ss:$36 sps:$4 sm:$0xff]   ;;  %v933_v50 = vld [vmem:[#allocation5 + $0xf0] ss:$36 sps:$4 sm:$0xff]  }
  0x38   :  { %548 = vmatprep.subr.bf16.mxu1 %v887_v18  ;;  %v941_v51 = vld [vmem:[#allocation5 + $0x13c] ss:$36 sps:$4 sm:$0xff]   ;;  %v930_v52 = vld [vmem:[#allocation5 + $0x130] ss:$36 sps:$4 sm:$0xff]   ;;  %v947_v55 = vld [vmem:[#allocation5 + $0x184] ss:$36 sps:$4 sm:$0xff]  }
  0x39   :  { %v938_v53 = vld [vmem:[#allocation5 + $0x17c] ss:$36 sps:$4 sm:$0xff]   ;;  %v944_v57 = vld [vmem:[#allocation5 + $0x1c4] ss:$36 sps:$4 sm:$0xff]   ;;  %v953_v59 = vld [vmem:[#allocation5 + $0x1cc] ss:$36 sps:$4 sm:$0xff]  }
  0x3a   :  { %506 = vmatpush1.bf16.msra.mxu0 %v886_v19  ;;  %v939_v54 = vld [vmem:[#allocation5 + $0x138] ss:$36 sps:$4 sm:$0xff]   ;;  %v945_v58 = vld [vmem:[#allocation5 + $0x180] ss:$36 sps:$4 sm:$0xff]   ;;  %v950_v61 = vld [vmem:[#allocation5 + $0x20c] ss:$36 sps:$4 sm:$0xff]  }
  0x3b   :  { %507 = vmatprep.subr.bf16.mxu0 %v889_v20  ;;  %549 = vmatpush1.bf16.msra.mxu1 %v891_v21  ;;  %v936_v56 = vld [vmem:[#allocation5 + $0x178] ss:$36 sps:$4 sm:$0xff]   ;;  %v942_v60 = vld [vmem:[#allocation5 + $0x1c0] ss:$36 sps:$4 sm:$0xff]   ;;  %v951_v62 = vld [vmem:[#allocation5 + $0x1c8] ss:$36 sps:$4 sm:$0xff]  }
  0x3c   :  { %550 = vmatprep.subr.bf16.mxu1 %v893_v22  ;;  %v956_v63 = vld [vmem:[#allocation5 + $0x214] ss:$36 sps:$4 sm:$0xff]   ;;  %v957_v2 = vld [vmem:[#allocation5 + $0x20] ss:$36 sps:$4 sm:$0xff]   ;;  %v1044_v3 = vmov 0.0   ;;  %vm1045_vm0 = vmmov 0  }
  0x3d   :  { %v954_v1 = vld [vmem:[#allocation5 + $0x210] ss:$36 sps:$4 sm:$0xff]   ;;  %v958_v4 = vld [vmem:[#allocation5 + $0x68] ss:$36 sps:$4 sm:$0xff]   ;;  %v960_v6 = vld [vmem:[#allocation5 + $0xf8] ss:$36 sps:$4 sm:$0xff]  }
  0x3e   :  { %508 = vmatpush1.bf16.msra.mxu0 %v892_v23  ;;  %v959_v5 = vld [vmem:[#allocation5 + $0xb0] ss:$36 sps:$4 sm:$0xff]   ;;  %v961_v7 = vld [vmem:[#allocation5 + $0x140] ss:$36 sps:$4 sm:$0xff]   ;;  %v962_v8 = vld [vmem:[#allocation5 + $0x188] ss:$36 sps:$4 sm:$0xff]  }
  0x3f   :  { %509 = vmatprep.subr.bf16.mxu0 %v895_v24  ;;  %551 = vmatpush1.bf16.msra.mxu1 %v897_v25  ;;  %v963_v9 = vld [vmem:[#allocation5 + $0x1d0] ss:$36 sps:$4 sm:$0xff]   ;;  %v964_v10 = vld [vmem:[#allocation5 + $0x218] ss:$36 sps:$4 sm:$0xff]   ;;  %s1046_s1 = smov [#allocation7]  }
  0x40   :  { %552 = vmatprep.subr.bf16.mxu1 %v899_v26  ;;  %s733_s8 = sshll.u32 %s1046_s1, 4  ;;  %s734_s8 = int_to_ptr.vmem [resolvable:$true] %s733_s8 }
  0x41   :  { %s1009_s9 = scalar_lea.vmem %s734_s8, 256  ;;  %p1014_p3 = scmp.lt.s32.totalorder %s734_s8, %s734_s8 }
  0x42   :  { %510 = vmatpush1.bf16.msra.mxu0 %v898_v27  ;;  %p1010_p2 = scmp.ne.s32.totalorder %s734_s8, %s1009_s9  ;;  %p1015_p4 = scmp.lt.s32.totalorder %s1009_s9, %s1009_s9 }
  0x43   :  { %511 = vmatprep.subr.bf16.mxu0 %v901_v28  ;;  %553 = vmatpush1.bf16.msra.mxu1 %v903_v29 }
  0x44   :  { %554 = vmatprep.subr.bf16.mxu1 %v905_v30  ;;  %p1016_p5 = por %p1015_p4, %p1014_p3 }
  0x46   :  { %512 = vmatpush1.bf16.msra.mxu0 %v904_v31  ;;  %p1017_p6 = pnand %p1016_p5, %p1010_p2 }
  0x47   :  { %583 = vmatprep.subr.bf16.mxu0 %v911_v33  ;;  %555 = vmatpush1.bf16.msra.mxu1 %v908_v34 }
  0x48   :  { %626 = vmatprep.subr.bf16.mxu1 %v917_v35 }
  0x49   :  { %530 = vmatmul.mubr.bf16.vlgmr.msra.gmra.mrb[0].mxu0 %v1090_v32 }
  0x4a   :  { %584 = vmatpush1.bf16.msra.mxu0 %v909_v36  ;;  %615 = vmatprep.mubr.bf16.mxu0 %v1043_v0 }
  0x4b   :  { %573 = vmatmul.mubr.bf16.vlgmr.msra.gmra.mrb[0].mxu1 %v1090_v32  ;;  %585 = vmatprep.subr.bf16.mxu0 %v914_v37 }
  0x4c   :  { %627 = vmatpush1.bf16.msra.mxu1 %v915_v38  ;;  %658 = vmatprep.mubr.bf16.mxu1 %v1043_v0  ;;  %v948_v0 = vld [vmem:[#allocation5 + $0x208] ss:$36 sps:$4 sm:$0xff]  }
  0x4d   :  { %628 = vmatprep.subr.bf16.mxu1 %v923_v39 }
  0x4e   :  { %586 = vmatpush1.bf16.msra.mxu0 %v912_v40 }
  0x4f   :  { %587 = vmatprep.subr.bf16.mxu0 %v920_v41 }
  0x50   :  { %629 = vmatpush1.bf16.msra.mxu1 %v921_v42 }
  0x51   :  { %630 = vmatprep.subr.bf16.mxu1 %v929_v43 }
  0x52   :  { %588 = vmatpush1.bf16.msra.mxu0 %v918_v44 }
  0x53   :  { %589 = vmatprep.subr.bf16.mxu0 %v926_v45 }
  0x54   :  { %631 = vmatpush1.bf16.msra.mxu1 %v927_v46 }
  0x55   :  { %632 = vmatprep.subr.bf16.mxu1 %v935_v47 }
  0x56   :  { %590 = vmatpush1.bf16.msra.mxu0 %v924_v48 }
  0x57   :  { %591 = vmatprep.subr.bf16.mxu0 %v932_v49 }
  0x58   :  { %633 = vmatpush1.bf16.msra.mxu1 %v933_v50 }
  0x59   :  { %634 = vmatprep.subr.bf16.mxu1 %v941_v51 }
  0x5a   :  { %592 = vmatpush1.bf16.msra.mxu0 %v930_v52 }
  0x5b   :  { %593 = vmatprep.subr.bf16.mxu0 %v938_v53 }
  0x5c   :  { %635 = vmatpush1.bf16.msra.mxu1 %v939_v54 }
  0x5d   :  { %636 = vmatprep.subr.bf16.mxu1 %v947_v55 }
  0x5e   :  { %594 = vmatpush1.bf16.msra.mxu0 %v936_v56 }
  0x5f   :  { %595 = vmatprep.subr.bf16.mxu0 %v944_v57 }
  0x60   :  { %637 = vmatpush1.bf16.msra.mxu1 %v945_v58 }
  0x61   :  { %638 = vmatprep.subr.bf16.mxu1 %v953_v59 }
  0x62   :  { %596 = vmatpush1.bf16.msra.mxu0 %v942_v60 }
  0x63   :  { %597 = vmatprep.subr.bf16.mxu0 %v950_v61 }
  0x64   :  { %639 = vmatpush1.bf16.msra.mxu1 %v951_v62 }
  0x65   :  { %640 = vmatprep.subr.bf16.mxu1 %v956_v63 }
  0x66   :  { %598 = vmatpush1.bf16.msra.mxu0 %v948_v0 }
  0x67   :  { %828 = vmatprep.subr.bf16.mxu0 %v1044_v3 }
  0x68   :  { %641 = vmatpush1.bf16.msra.mxu1 %v954_v1 }
  0x69   :  { %616 = vmatmul.mubr.bf16.vlgmr.msra.gmra.mrb[4].mxu0 %v1090_v32 }
  0x6a   :  { %829 = vmatpush3.bf16.msra.mxu0 %v957_v2  ;;  %844 = vmatprep.mubr.msk.bf16.mxu0 %vm1045_vm0, %v1044_v3 }
  0x6b   :  { %659 = vmatmul.mubr.bf16.vlgmr.msra.gmra.mrb[4].mxu1 %v1090_v32  ;;  %830 = vmatprep.subr.bf16.mxu0 %v1044_v3 }
  0x6e   :  { %831 = vmatpush3.bf16.msra.mxu0 %v958_v4 }
  0x6f   :  { %832 = vmatprep.subr.bf16.mxu0 %v1044_v3 }
  0x72   :  { %833 = vmatpush3.bf16.msra.mxu0 %v959_v5 }
  0x73   :  { %834 = vmatprep.subr.bf16.mxu0 %v1044_v3 }
  0x76   :  { %835 = vmatpush3.bf16.msra.mxu0 %v960_v6 }
  0x77   :  { %836 = vmatprep.subr.bf16.mxu0 %v1044_v3 }
  0x7a   :  { %837 = vmatpush3.bf16.msra.mxu0 %v961_v7 }
  0x7b   :  { %838 = vmatprep.subr.bf16.mxu0 %v1044_v3 }
  0x7e   :  { %839 = vmatpush3.bf16.msra.mxu0 %v962_v8 }
  0x7f   :  { %840 = vmatprep.subr.bf16.mxu0 %v1044_v3 }
  0x82   :  { %841 = vmatpush3.bf16.msra.mxu0 %v963_v9 }
  0x83   :  { %842 = vmatprep.subr.bf16.mxu0 %v1044_v3 }
  0x86   :  { %843 = vmatpush3.bf16.msra.mxu0 %v964_v10 }
  0x89   :  { %845 = vmatmul.mubr.bf16.vlgmr.msra.gmra.mrb[8].mxu0 %v1090_v32 }
 0x11c   :  { %v531_v11 = vpop.f32.mrb[0].mxu0 }
 0x11d   :  { %v533_v12 = vpop.f32.mrb[1].mxu0 }
 0x11e   :  { %v710_v13 = vmax.f32 %v531_v11, %v533_v12  ;;  %v535_v14 = vpop.f32.mrb[2].mxu0  ;;  %v574_v15 = vpop.f32.mrb[0].mxu1 }
 0x11f   :  { %v537_v16 = vpop.f32.mrb[3].mxu0  ;;  %v576_v17 = vpop.f32.mrb[1].mxu1 }
 0x120   :  { %v711_v18 = vmax.f32 %v535_v14, %v537_v16  ;;  %v712_v19 = vmax.f32 %v710_v13, %v574_v15  ;;  %v578_v20 = vpop.f32.mrb[2].mxu1 }
 0x121   :  { %v580_v21 = vpop.f32.mrb[3].mxu1 }
 0x122   :  { %v714_v22 = vmax.f32 %v712_v19, %v576_v17  ;;  %v713_v23 = vmax.f32 %v711_v18, %v578_v20 }
 0x124   :  { %v715_v24 = vmax.f32 %v713_v23, %v580_v21 }
 0x13c   :  { %v617_v25 = vpop.f32.mrb[4].mxu0 }
 0x13d   :  { %v716_v26 = vmax.f32 %v714_v22, %v617_v25  ;;  %v619_v27 = vpop.f32.mrb[5].mxu0 }
 0x13e   :  { %v621_v28 = vpop.f32.mrb[6].mxu0  ;;  %v660_v29 = vpop.f32.mrb[4].mxu1 }
 0x13f   :  { %v718_v30 = vmax.f32 %v716_v26, %v619_v27  ;;  %v717_v31 = vmax.f32 %v715_v24, %v621_v28  ;;  %v623_v32 = vpop.f32.mrb[7].mxu0  ;;  %v662_v33 = vpop.f32.mrb[5].mxu1 }
 0x140   :  { %v664_v34 = vpop.f32.mrb[6].mxu1 }
 0x141   :  { %v719_v35 = vmax.f32 %v717_v31, %v623_v32  ;;  %v720_v36 = vmax.f32 %v718_v30, %v660_v29  ;;  %v666_v37 = vpop.f32.mrb[7].mxu1 }
 0x143   :  { %v722_v38 = vmax.f32 %v720_v36, %v662_v33  ;;  %v721_v39 = vmax.f32 %v719_v35, %v664_v34 }
 0x145   :  { %v723_v40 = vmax.f32 %v721_v39, %v666_v37 }
 0x15c   :  { %v703_v41 = vpop.f32.mrb[8].mxu0 }
 0x15d   :  { %v724_v42 = vmax.f32 %v722_v38, %v703_v41  ;;  %v846_v43 = vpop.f32.mrb[9].mxu0 }
 0x15e   :  { %v706_v44 = vpop.f32.mrb[10].mxu0 }
 0x15f   :  { %726 = vst [vmem:[#allocation7] sm:$0xff] %v724_v42  ;;  %v725_v45 = vmax.f32 %v723_v40, %v706_v44  ;;  %v847_v46 = vpop.f32.mrb[11].mxu0 }
 0x161   :  { %727 = vst [vmem:[#allocation7 + $0x8] sm:$0xff] %v725_v45 }
 0x162   :  { %1020 = shalt.err (!%p1017_p6)
}
 0x163   :  { %s1021_s12 = scalar_lea.hbm %s1113_s2, 256 }
 0x164   :  { %p1022_p7 = scmp.ne.s32.totalorder %s1113_s2, %s1021_s12  ;;  %p1025_p8 = scmp.lt.u32.totalorder %s1021_s12, %s1113_s2 }
 0x166   :  { %p1027_p9 = pnand %p1025_p8, %p1022_p7 }
 0x168   :  { %1030 = shalt.err (!%p1027_p9)
}
 0x169   :  { %s1047_s17 = smov 128   ;;  %s1048_s18 = smov 8  }
 0x16a   :  { %739 = dma.vmem_to_hbm [thread:$0]  %s734_s8, 256, %s1113_s2, [#allocation4], %s1047_s17, %s1047_s17, %s1048_s18  }
 0x16b   :  { %1035 = dma.done.wait [#allocation4], 256  }
 0x16c   :  { %1036 = vsyncadd [#allocation4], 4294967040 }
 0x16d   :  { %743 = vsyncpa [#allocation3], 1 }
 0x16e   :  { %744 = vsyncpa [#allocation6], 1 }
 0x16f   :  { %745 = vsyncpa [#allocation4], 1 }

</bundles_post_ra>
